<compile_context>
chip_gen: v6e
topology: v6e:2x2x1
jax: 0.10.0
libtpu: 0.0.40
codegen_flags: <defaults>
</compile_context>

<pallas_src>
import functools

import jax
import jax.numpy as jnp
from jax.experimental import pallas as pl
from jax.experimental.pallas import tpu as pltpu

LANE = 128  # vreg lane width / MXU granule


def _round_up(x, m):
    return -(-x // m) * m


def _mlp_fused_kernel(*refs, num_layers: int):
    # refs = (x_ref, w0_ref, b0_ref, w1_ref, b1_ref, ..., o_ref)
    x_ref = refs[0]
    o_ref = refs[-1]
    h = x_ref[...]
    # Static (unrolled) Python loop over the few layers: per-layer refs, full
    # LLO scheduler visibility, single fused epilogue (bias + ReLU + cast) per
    # layer -- free filler under the MXU on v6e/v7x.
    for i in range(num_layers):
        w = refs[1 + 2 * i][...]          # (K, N) bf16, resident in VMEM
        b = refs[2 + 2 * i][...]          # (1, N) f32
        acc = jnp.dot(h.astype(w.dtype), w, preferred_element_type=jnp.float32)
        acc = acc + b.astype(jnp.float32)
        if i < num_layers - 1:
            acc = jnp.maximum(acc, 0.0)
        h = acc
    o_ref[...] = h.astype(o_ref.dtype)


def mlp_forward_pallas(x2d, params, logical_out_dim, *, tm_max=1024):
    """Fused MLP forward.

    x2d:    (M, K0) activations (f32 or bf16; bf16 halves streamed HBM bytes).
    params: list of (w: (K, N) bf16, b: (1, N) f32); N is a multiple of 128
            (lane-dense), zero-padded beyond the logical feature dims.
    Returns (M, logical_out_dim) in x2d's dtype.
    """
    M, K0 = x2d.shape
    num_layers = len(params)
    n_out = params[-1][0].shape[1]                 # padded (lane-dense) width
    x_dtype = x2d.dtype
    sub = 8 if x_dtype.itemsize >= 4 else 16       # sublane granule

    # --- Balanced row tiling -------------------------------------------
    if M > tm_max:
        num_tiles = -(-M // tm_max)
    elif M >= 512:
        num_tiles = 2          # let the "parallel" axis use both v7x TCs
    else:
        num_tiles = 1
    tm = _round_up(-(-M // num_tiles), sub)
    Mp = num_tiles * tm
    if Mp != M:
        x2d = jnp.pad(x2d, ((0, Mp - M), (0, 0)))
    grid = (num_tiles,)

    # --- Specs / cost / VMEM budget --------------------------------------
    flat_inputs = [x2d]
    in_specs = [pl.BlockSpec((tm, K0), lambda i: (i, 0))]
    flops = 0
    weight_bytes = 0
    for (w, b) in params:
        kin, nout = w.shape
        flat_inputs += [w, b]
        # Grid-invariant weights/biases: whole array resident in VMEM, single
        # copy (no double-buffered per-step DMA).
        in_specs += [pl.BlockSpec(memory_space=pltpu.MemorySpace.VMEM),
                     pl.BlockSpec(memory_space=pltpu.MemorySpace.VMEM)]
        flops += 2 * Mp * kin * nout
        weight_bytes += w.size * w.dtype.itemsize + b.size * b.dtype.itemsize

    stream_bytes = Mp * (K0 + n_out) * x_dtype.itemsize
    max_width = max([K0] + [w.shape[1] for (w, _) in params])
    vmem_needed = (2 * tm * K0 * x_dtype.itemsize       # x block (double-buffered)
                   + 2 * tm * n_out * x_dtype.itemsize  # out block (double-buffered)
                   + weight_bytes                       # resident weights (x1)
                   + 4 * tm * max_width * 4)            # f32 intermediates headroom
    # Cap at 60 MiB so the request is valid on v7x (64 MiB physical) as well
    # as v5e/v6e (128 MiB); floor at 8 MiB.
    vmem_limit = int(min(max(2 * vmem_needed, 8 << 20), 60 << 20))

    kernel = functools.partial(_mlp_fused_kernel, num_layers=num_layers)
    out = pl.pallas_call(
        kernel,
        out_shape=jax.ShapeDtypeStruct((Mp, n_out), x_dtype),
        grid_spec=pltpu.PrefetchScalarGridSpec(
            num_scalar_prefetch=0,
            grid=grid,
            in_specs=in_specs,
            out_specs=pl.BlockSpec((tm, n_out), lambda i: (i, 0)),
        ),
        compiler_params=pltpu.CompilerParams(
            dimension_semantics=("parallel",),   # row tiles are independent
            vmem_limit_bytes=vmem_limit),
        cost_estimate=pl.CostEstimate(
            flops=flops, transcendentals=0,
            bytes_accessed=stream_bytes + weight_bytes),
    )(*flat_inputs)
    return out[:M, :logical_out_dim]


class MLP:
    """JAX/Pallas port of the PyTorch MLP (FFN)."""

    def __init__(self, input_dim, hidden_dim, output_dim, num_layers, key):
        self.num_layers = num_layers
        self.output_dim = output_dim
        h = [hidden_dim] * (num_layers - 1)
        dims_in = [input_dim] + h
        dims_out = h + [output_dim]
        self.params = []
        prev_pad = input_dim  # layer-0 contraction dim stays unpadded (x's lane dim)
        for n, k in zip(dims_in, dims_out):
            key, kw, kb = jax.random.split(key, 3)
            bound = 1.0 / (n ** 0.5)  # nn.Linear default init range
            w = jax.random.uniform(kw, (n, k), jnp.float32, -bound, bound)
            b = jax.random.uniform(kb, (k,), jnp.float32, -bound, bound)
            # Lane-dense, zero-padded storage: weight pre-transposed to
            # (in_pad, out_pad) bf16 for the MXU; bias stays f32 and is added
            # to the f32 accumulator.  Zero pad columns/rows contribute 0.
            k_pad = _round_up(k, LANE)
            w_pad = jnp.zeros((prev_pad, k_pad), jnp.float32).at[:n, :k].set(w)
            b_pad = jnp.zeros((1, k_pad), jnp.float32).at[0, :k].set(b)
            self.params.append((w_pad.astype(jnp.bfloat16), b_pad))
            prev_pad = k_pad

    def __call__(self, x):
        leading = x.shape[:-1]
        x2d = x.reshape(-1, x.shape[-1])
        out = mlp_forward_pallas(x2d, self.params, self.output_dim)
        return out.reshape(*leading, self.output_dim)


if __name__ == "__main__":
    key = jax.random.PRNGKey(0)
    key, kx, kp = jax.random.split(key, 3)

    # Small shapes consistent with the module: x: (batch, seq, input_dim)
    batch, seq = 2, 8
    input_dim, hidden_dim, output_dim, num_layers = 16, 32, 4, 3

    x = jax.random.normal(kx, (batch, seq, input_dim), jnp.float32)
    mlp = MLP(input_dim, hidden_dim, output_dim, num_layers, kp)

    out = jax.block_until_ready(mlp(x))

    # Pure-JAX reference mirroring the kernel math (bf16 matmul inputs, f32
    # accumulate, f32 bias + ReLU).  Padded columns are exactly zero, so
    # slicing the first `output_dim` columns recovers the logical result.
    ref = x.reshape(-1, input_dim).astype(jnp.float32)
    for i, (w, b) in enumerate(mlp.params):
        acc = jnp.dot(ref.astype(w.dtype), w,
                      preferred_element_type=jnp.float32) + b
        ref = jnp.maximum(acc, 0.0) if i < num_layers - 1 else acc
    ref = ref[:, :output_dim].reshape(batch, seq, output_dim)

    assert out.shape == (batch, seq, output_dim)
    assert jnp.allclose(out, ref, atol=2e-2, rtol=2e-2), float(
        jnp.max(jnp.abs(out - ref)))

    print("KERNEL_OK")
</pallas_src>

<mosaic_0001>
module attributes {stable_mosaic.version = 11 : i64} {
  func.func @_mlp_fused_kernel(%arg0: i32, %arg1: memref<16x16xf32, #tpu.memory_space<vmem>>, %arg2: memref<16x128xbf16, #tpu.memory_space<vmem>>, %arg3: memref<1x128xf32, #tpu.memory_space<vmem>>, %arg4: memref<128x128xbf16, #tpu.memory_space<vmem>>, %arg5: memref<1x128xf32, #tpu.memory_space<vmem>>, %arg6: memref<128x128xbf16, #tpu.memory_space<vmem>>, %arg7: memref<1x128xf32, #tpu.memory_space<vmem>>, %arg8: memref<16x128xf32, #tpu.memory_space<vmem>>) attributes {dimension_semantics = [#tpu.dimension_semantics<parallel>], iteration_bounds = array<i64: 1>, scalar_prefetch = 0 : i64, scratch_operands = 0 : i64, tpu.core_type = #tpu.core_type<tc>, window_params = [{transform_indices = @transform_0, window_bounds = array<i64: 16, 16>}, {pipeline_mode = #tpu.pipeline_mode<synchronous>, transform_indices = @transform_1, window_bounds = array<i64: 16, 128>}, {pipeline_mode = #tpu.pipeline_mode<synchronous>, transform_indices = @transform_2, window_bounds = array<i64: 1, 128>}, {pipeline_mode = #tpu.pipeline_mode<synchronous>, transform_indices = @transform_3, window_bounds = array<i64: 128, 128>}, {pipeline_mode = #tpu.pipeline_mode<synchronous>, transform_indices = @transform_4, window_bounds = array<i64: 1, 128>}, {pipeline_mode = #tpu.pipeline_mode<synchronous>, transform_indices = @transform_5, window_bounds = array<i64: 128, 128>}, {pipeline_mode = #tpu.pipeline_mode<synchronous>, transform_indices = @transform_6, window_bounds = array<i64: 1, 128>}, {transform_indices = @transform_7, window_bounds = array<i64: 16, 128>}]} {
    %c0 = arith.constant 0 : index
    %c0_0 = arith.constant 0 : index
    %0 = vector.load %arg1[%c0, %c0_0] : memref<16x16xf32, #tpu.memory_space<vmem>>, vector<16x16xf32>
    %c0_1 = arith.constant 0 : index
    %c0_2 = arith.constant 0 : index
    %1 = vector.load %arg2[%c0_1, %c0_2] : memref<16x128xbf16, #tpu.memory_space<vmem>>, vector<16x128xbf16>
    %c0_3 = arith.constant 0 : index
    %c0_4 = arith.constant 0 : index
    %2 = vector.load %arg3[%c0_3, %c0_4] : memref<1x128xf32, #tpu.memory_space<vmem>>, vector<1x128xf32>
    %3 = arith.truncf %0 : vector<16x16xf32> to vector<16x16xbf16>
    %cst = arith.constant dense<0.000000e+00> : vector<16x128xf32>
    %4 = tpu.matmul %3, %1, %cst {dimension_numbers = #tpu.dot_dimension_numbers<[1], [0], [0], [1], [0, 0, 1, 1], [], []>} : vector<16x16xbf16>, vector<16x128xbf16>, vector<16x128xf32> -> vector<16x128xf32>
    %5 = vector.broadcast %2 : vector<1x128xf32> to vector<16x128xf32>
    %6 = arith.addf %4, %5 : vector<16x128xf32>
    %cst_5 = arith.constant 0.000000e+00 : f32
    %7 = vector.broadcast %cst_5 : f32 to vector<16x128xf32>
    %8 = arith.maximumf %6, %7 : vector<16x128xf32>
    %c0_6 = arith.constant 0 : index
    %c0_7 = arith.constant 0 : index
    %9 = vector.load %arg4[%c0_6, %c0_7] : memref<128x128xbf16, #tpu.memory_space<vmem>>, vector<128x128xbf16>
    %c0_8 = arith.constant 0 : index
    %c0_9 = arith.constant 0 : index
    %10 = vector.load %arg5[%c0_8, %c0_9] : memref<1x128xf32, #tpu.memory_space<vmem>>, vector<1x128xf32>
    %11 = arith.truncf %8 : vector<16x128xf32> to vector<16x128xbf16>
    %cst_10 = arith.constant dense<0.000000e+00> : vector<16x128xf32>
    %12 = tpu.matmul %11, %9, %cst_10 {dimension_numbers = #tpu.dot_dimension_numbers<[1], [0], [0], [1], [0, 0, 1, 1], [], []>} : vector<16x128xbf16>, vector<128x128xbf16>, vector<16x128xf32> -> vector<16x128xf32>
    %13 = vector.broadcast %10 : vector<1x128xf32> to vector<16x128xf32>
    %14 = arith.addf %12, %13 : vector<16x128xf32>
    %cst_11 = arith.constant 0.000000e+00 : f32
    %15 = vector.broadcast %cst_11 : f32 to vector<16x128xf32>
    %16 = arith.maximumf %14, %15 : vector<16x128xf32>
    %c0_12 = arith.constant 0 : index
    %c0_13 = arith.constant 0 : index
    %17 = vector.load %arg6[%c0_12, %c0_13] : memref<128x128xbf16, #tpu.memory_space<vmem>>, vector<128x128xbf16>
    %c0_14 = arith.constant 0 : index
    %c0_15 = arith.constant 0 : index
    %18 = vector.load %arg7[%c0_14, %c0_15] : memref<1x128xf32, #tpu.memory_space<vmem>>, vector<1x128xf32>
    %19 = arith.truncf %16 : vector<16x128xf32> to vector<16x128xbf16>
    %cst_16 = arith.constant dense<0.000000e+00> : vector<16x128xf32>
    %20 = tpu.matmul %19, %17, %cst_16 {dimension_numbers = #tpu.dot_dimension_numbers<[1], [0], [0], [1], [0, 0, 1, 1], [], []>} : vector<16x128xbf16>, vector<128x128xbf16>, vector<16x128xf32> -> vector<16x128xf32>
    %21 = vector.broadcast %18 : vector<1x128xf32> to vector<16x128xf32>
    %22 = arith.addf %20, %21 : vector<16x128xf32>
    %c0_17 = arith.constant 0 : index
    %c0_18 = arith.constant 0 : index
    %23 = vector.load %arg8[%c0_17, %c0_18] : memref<16x128xf32, #tpu.memory_space<vmem>>, vector<16x128xf32>
    tpu.vector_store %arg8[%c0_17, %c0_18], %22 {strides = array<i32>} : memref<16x128xf32, #tpu.memory_space<vmem>>, vector<16x128xf32>,
    return
  }
  func.func @transform_0(%arg0: i32) -> (i32, i32) {
    %c0_i32 = arith.constant 0 : i32
    %c0_i32_0 = arith.constant 0 : i32
    return %arg0, %c0_i32 : i32, i32
  }
  func.func @transform_1(%arg0: i32) -> (i32, i32) {
    %c0_i32 = arith.constant 0 : i32
    %c0_i32_0 = arith.constant 0 : i32
    %c0_i32_1 = arith.constant 0 : i32
    return %c0_i32, %c0_i32_0 : i32, i32
  }
  func.func @transform_2(%arg0: i32) -> (i32, i32) {
    %c0_i32 = arith.constant 0 : i32
    %c0_i32_0 = arith.constant 0 : i32
    %c0_i32_1 = arith.constant 0 : i32
    return %c0_i32, %c0_i32_0 : i32, i32
  }
  func.func @transform_3(%arg0: i32) -> (i32, i32) {
    %c0_i32 = arith.constant 0 : i32
    %c0_i32_0 = arith.constant 0 : i32
    %c0_i32_1 = arith.constant 0 : i32
    return %c0_i32, %c0_i32_0 : i32, i32
  }
  func.func @transform_4(%arg0: i32) -> (i32, i32) {
    %c0_i32 = arith.constant 0 : i32
    %c0_i32_0 = arith.constant 0 : i32
    %c0_i32_1 = arith.constant 0 : i32
    return %c0_i32, %c0_i32_0 : i32, i32
  }
  func.func @transform_5(%arg0: i32) -> (i32, i32) {
    %c0_i32 = arith.constant 0 : i32
    %c0_i32_0 = arith.constant 0 : i32
    %c0_i32_1 = arith.constant 0 : i32
    return %c0_i32, %c0_i32_0 : i32, i32
  }
  func.func @transform_6(%arg0: i32) -> (i32, i32) {
    %c0_i32 = arith.constant 0 : i32
    %c0_i32_0 = arith.constant 0 : i32
    %c0_i32_1 = arith.constant 0 : i32
    return %c0_i32, %c0_i32_0 : i32, i32
  }
  func.func @transform_7(%arg0: i32) -> (i32, i32) {
    %c0_i32 = arith.constant 0 : i32
    %c0_i32_0 = arith.constant 0 : i32
    return %arg0, %c0_i32 : i32, i32
  }
}

</mosaic_0001>

<bundles_post_ra>
// kernel: tpu_custom_call.1
= control target key start
LH: loop header
LB: loop body
LE: loop exit
PB: predicated region body
PF: predicated region fallthrough
CT: control target
= control target key end

     0   :  { %12 = vsyncpa [#allocation3], 0  ;;  %s733_s0 = inlined_call_operand.hbm [shape: f32[16,16], index: 0, kind: input, shape index: {}]   ;;  %s734_s1 = inlined_call_operand.hbm [shape: bf16[16,128], index: 1, kind: input, shape index: {}]   ;;  %s735_s2 = inlined_call_operand.vmem [shape: f32[1,128], index: 2, kind: input, shape index: {}]   ;;  %s736_s3 = inlined_call_operand.hbm [shape: bf16[128,128], index: 3, kind: input, shape index: {}]   ;;  %s737_s4 = inlined_call_operand.vmem [shape: f32[1,128], index: 4, kind: input, shape index: {}]   ;;  %s738_s5 = inlined_call_operand.hbm [shape: bf16[128,128], index: 5, kind: input, shape index: {}]   ;;  %s739_s6 = inlined_call_operand.vmem [shape: f32[1,128], index: 6, kind: input, shape index: {}]   ;;  %s740_s7 = inlined_call_operand.hbm [shape: f32[16,128], index: 7, kind: output, shape index: {}]  }
   0x1   :  { %13 = vsyncpa [#allocation6], 0 }
   0x2   :  { %14 = vsyncpa [#allocation9], 0 }
   0x3   :  { %15 = vsyncpa [#allocation4], 0  ;;  %s620_s24 = smov [#allocation5]  }
   0x4   :  { %s33_s25 = sshll.u32 %s620_s24, 4  ;;  %s34_s25 = int_to_ptr.vmem [resolvable:$true] %s33_s25 }
   0x5   :  { %s520_s26 = scalar_lea.vmem %s34_s25, 128  ;;  %p525_p1 = scmp.lt.s32.totalorder %s34_s25, %s34_s25 }
   0x6   :  { %p521_p0 = scmp.ne.s32.totalorder %s34_s25, %s520_s26  ;;  %p526_p2 = scmp.lt.s32.totalorder %s520_s26, %s520_s26 }
   0x8   :  { %p527_p3 = por %p526_p2, %p525_p1 }
   0xa   :  { %p528_p4 = pnand %p527_p3, %p521_p0 }
   0xc   :  { %531 = shalt.err (!%p528_p4)
}
   0xd   :  { %s621_s27 = smov 64   ;;  %s622_s28 = smov 4  }
   0xe   :  { %39 = dma.hbm_to_vmem [thread:$0]  %s734_s1, 128, %s34_s25, [#allocation6], %s621_s27, %s621_s27, %s622_s28  }
   0xf   :  { %s623_s8 = smov [#allocation2]  }
  0x10   :  { %s21_s9 = sshll.u32 %s623_s8, 4  ;;  %s22_s9 = int_to_ptr.vmem [resolvable:$true] %s21_s9 }
  0x11   :  { %s540_s10 = scalar_lea.vmem %s22_s9, 256  ;;  %p545_p6 = scmp.lt.s32.totalorder %s22_s9, %s22_s9 }
  0x12   :  { %p541_p5 = scmp.ne.s32.totalorder %s22_s9, %s540_s10  ;;  %p546_p7 = scmp.lt.s32.totalorder %s540_s10, %s540_s10 }
  0x14   :  { %p547_p8 = por %p546_p7, %p545_p6 }
  0x16   :  { %p548_p9 = pnand %p547_p8, %p541_p5 }
  0x18   :  { %551 = shalt.err (!%p548_p9)
}
  0x19   :  { %s624_s11 = smov 128   ;;  %s625_s12 = smov 8  }
  0x1a   :  { %27 = dma.hbm_to_vmem [thread:$0]  %s733_s0, 256, %s22_s9, [#allocation3], %s624_s11, %s624_s11, %s625_s12  }
  0x1b   :  { %s626_s1 = smov [#allocation7]   ;;  %s627_s16 = smov [#allocation8]  }
  0x1c   :  { %s47_s15 = sshll.u32 %s626_s1, 4  ;;  %s61_s17 = sshll.u32 %s627_s16, 4  ;;  %s48_s15 = int_to_ptr.vmem [resolvable:$true] %s47_s15  ;;  %s62_s17 = int_to_ptr.vmem [resolvable:$true] %s61_s17 }
  0x1d   :  { %s560_s18 = scalar_lea.vmem %s48_s15, 1024  ;;  %p565_p11 = scmp.lt.s32.totalorder %s48_s15, %s48_s15 }
  0x1e   :  { %p561_p10 = scmp.ne.s32.totalorder %s48_s15, %s560_s18  ;;  %p566_p12 = scmp.lt.s32.totalorder %s560_s18, %s560_s18 }
  0x20   :  { %p567_p13 = por %p566_p12, %p565_p11 }
  0x22   :  { %p568_p0 = pnand %p567_p13, %p561_p10 }
  0x24   :  { %571 = shalt.err (!%p568_p0)
}
  0x25   :  { %53 = dma.hbm_to_vmem [thread:$0]  %s736_s3, 1024, %s48_s15, [#allocation6], %s621_s27, %s621_s27, %s622_s28  }
  0x26   :  { %s580_s0 = scalar_lea.vmem %s62_s17, 1024  ;;  %p585_p2 = scmp.lt.s32.totalorder %s62_s17, %s62_s17 }
  0x27   :  { %p581_p1 = scmp.ne.s32.totalorder %s62_s17, %s580_s0  ;;  %p586_p3 = scmp.lt.s32.totalorder %s580_s0, %s580_s0 }
  0x29   :  { %p587_p4 = por %p586_p3, %p585_p2 }
  0x2b   :  { %p588_p5 = pnand %p587_p4, %p581_p1 }
  0x2d   :  { %591 = shalt.err (!%p588_p5)
}
  0x2e   :  { %67 = dma.hbm_to_vmem [thread:$0]  %s738_s5, 1024, %s62_s17, [#allocation9], %s621_s27, %s621_s27, %s622_s28  }
  0x2f   :  { %612 = dma.done.wait [#allocation3], 256  }
  0x30   :  { %613 = vsyncadd [#allocation3], 4294967040 }
  0x31   :  { %614 = dma.done.wait [#allocation6], 1152  }
  0x32   :  { %615 = vsyncadd [#allocation6], 4294966144 }
  0x33   :  { %616 = dma.done.wait [#allocation9], 1024  }
  0x34   :  { %617 = vsyncadd [#allocation9], 4294966272  ;;  %v628_v0 = vmov 0.0   ;;  %vm629_vm0 = vmmov 0   ;;  %v495_v1 = vld [vmem:[#allocation5] sm:$0xff]   ;;  %v83_v2 = vld [vmem:[#allocation2] sm:$0xff] }
  0x35   :  { %438 = vmatprep.subr.bf16.mxu0 %v628_v0  ;;  %440 = vmatprep.mubr.msk.bf16.mxu0 %vm629_vm0, %v628_v0  ;;  %v84_v3 = vld [vmem:[#allocation2 + $0x8] sm:$0xff]  ;;  %vm101_vm1 = vcmask 130048   ;;  %v496_v5 = vld [vmem:[#allocation7 + $0x38] sm:$0xff]   ;;  %v498_v7 = vld [vmem:[#allocation7 + $0x28] sm:$0xff]   ;;  %s630_s26 = smov [#allocation10]  }
  0x36   :  { %444 = vmatprep.subr.bf16.mxu1 %v628_v0  ;;  %460 = vmatprep.mubr.msk.bf16.mxu1 %vm629_vm0, %v628_v0  ;;  %v88_v4 = vpack.c.bf16 %v84_v3, %v83_v2  ;;  %v497_v6 = vld [vmem:[#allocation7 + $0x30] sm:$0xff]   ;;  %v499_v8 = vld [vmem:[#allocation7 + $0x20] sm:$0xff]   ;;  %v500_v9 = vld [vmem:[#allocation7 + $0x18] sm:$0xff]   ;;  %s383_s27 = sshll.u32 %s630_s26, 4  ;;  %s384_s27 = int_to_ptr.vmem [resolvable:$true] %s383_s27 }
  0x37   :  { %439 = vmatpush3.bf16.msra.mxu0 %v495_v1  ;;  %445 = vmatpush3.bf16.msra.mxu1 %v496_v5  ;;  %v501_v10 = vld [vmem:[#allocation7 + $0x10] sm:$0xff]   ;;  %v502_v11 = vld [vmem:[#allocation7 + $0x8] sm:$0xff]   ;;  %v503_v12 = vld [vmem:[#allocation7] sm:$0xff]   ;;  %p597_p7 = scmp.lt.s32.totalorder %s384_s27, %s384_s27 }
  0x38   :  { %464 = vmatprep.subr.bf16.mxu0 %v628_v0  ;;  %446 = vmatprep.subr.bf16.mxu1 %v628_v0  ;;  %v504_v13 = vld [vmem:[#allocation8 + $0x38] sm:$0xff]   ;;  %v505_v14 = vld [vmem:[#allocation8 + $0x30] sm:$0xff]   ;;  %v506_v15 = vld [vmem:[#allocation8 + $0x28] sm:$0xff]  }
  0x39   :  { %v507_v16 = vld [vmem:[#allocation8 + $0x20] sm:$0xff]   ;;  %v508_v17 = vld [vmem:[#allocation8 + $0x18] sm:$0xff]   ;;  %v397_v18 = vld [vmem:[%s735_s2] ss:$0 sm:$0xff] }
  0x3a   :  { %441 = vmatmul.mubr.msk.bf16.vlgmr.msra.gmra.mxu0 %vm101_vm1, %v88_v4  ;;  %v509_v28 = vld [vmem:[#allocation8 + $0x10] sm:$0xff]   ;;  %v510_v29 = vld [vmem:[#allocation8 + $0x8] sm:$0xff]   ;;  %v511_v30 = vld [vmem:[#allocation8] sm:$0xff]  }
  0x3b   :  { %480 = vmatprep.mubr.msk.bf16.mxu0 %vm629_vm0, %v628_v0  ;;  %447 = vmatpush3.bf16.msra.mxu1 %v497_v6  ;;  %v400_v31 = vld [vmem:[%s737_s4] ss:$0 sm:$0xff]  ;;  %s592_s4 = scalar_lea.vmem %s384_s27, 256 }
  0x3c   :  { %448 = vmatprep.subr.bf16.mxu1 %v628_v0  ;;  %465 = vmatpush3.bf16.msra.mxu0 %v504_v13  ;;  %v409_v41 = vld [vmem:[%s739_s6] ss:$0 sm:$0xff]  ;;  %p593_p6 = scmp.ne.s32.totalorder %s384_s27, %s592_s4  ;;  %p598_p8 = scmp.lt.s32.totalorder %s592_s4, %s592_s4 }
  0x3d   :  { %466 = vmatprep.subr.bf16.mxu0 %v628_v0 }
  0x3e   :  { %p599_p9 = por %p598_p8, %p597_p7 }
  0x3f   :  { %449 = vmatpush3.bf16.msra.mxu1 %v498_v7 }
  0x40   :  { %450 = vmatprep.subr.bf16.mxu1 %v628_v0  ;;  %467 = vmatpush3.bf16.msra.mxu0 %v505_v14  ;;  %p600_p10 = pnand %p599_p9, %p593_p6 }
  0x41   :  { %468 = vmatprep.subr.bf16.mxu0 %v628_v0 }
  0x43   :  { %451 = vmatpush3.bf16.msra.mxu1 %v499_v8 }
  0x44   :  { %452 = vmatprep.subr.bf16.mxu1 %v628_v0  ;;  %469 = vmatpush3.bf16.msra.mxu0 %v506_v15 }
  0x45   :  { %470 = vmatprep.subr.bf16.mxu0 %v628_v0 }
  0x47   :  { %453 = vmatpush3.bf16.msra.mxu1 %v500_v9 }
  0x48   :  { %454 = vmatprep.subr.bf16.mxu1 %v628_v0  ;;  %471 = vmatpush3.bf16.msra.mxu0 %v507_v16 }
  0x49   :  { %472 = vmatprep.subr.bf16.mxu0 %v628_v0 }
  0x4b   :  { %455 = vmatpush3.bf16.msra.mxu1 %v501_v10 }
  0x4c   :  { %456 = vmatprep.subr.bf16.mxu1 %v628_v0  ;;  %473 = vmatpush3.bf16.msra.mxu0 %v508_v17 }
  0x4d   :  { %474 = vmatprep.subr.bf16.mxu0 %v628_v0 }
  0x4f   :  { %457 = vmatpush3.bf16.msra.mxu1 %v502_v11 }
  0x50   :  { %458 = vmatprep.subr.bf16.mxu1 %v628_v0  ;;  %475 = vmatpush3.bf16.msra.mxu0 %v509_v28 }
  0x51   :  { %476 = vmatprep.subr.bf16.mxu0 %v628_v0 }
  0x53   :  { %459 = vmatpush3.bf16.msra.mxu1 %v503_v12 }
  0x54   :  { %477 = vmatpush3.bf16.msra.mxu0 %v510_v29 }
  0x55   :  { %478 = vmatprep.subr.bf16.mxu0 %v628_v0 }
  0x58   :  { %479 = vmatpush3.bf16.msra.mxu0 %v511_v30 }
  0xfa   :  { %v139_v19 = vpop.f32.mrf.mxu0 }
  0xfb   :  { %v140_v21 = vadd.f32 %v397_v18, %v139_v19 }
  0xfc   :  { %v442_v20 = vpop.f32.mrf.mxu0 }
  0xfd   :  { %v146_v25 = vmax.f32 %v140_v21, 0.0 }
  0xfe   :  { %v142_v22 = vpop.f32.mrf.mxu0 }
  0xff   :  { %v143_v23 = vadd.f32 %v397_v18, %v142_v22 }
 0x100   :  { %v443_v24 = vpop.f32.mrf.mxu0 }
 0x101   :  { %v147_v26 = vmax.f32 %v143_v23, 0.0 }
 0x103   :  { %v165_v27 = vpack.c.bf16 %v147_v26, %v146_v25 }
 0x105   :  { %461 = vmatmul.mubr.bf16.vlgmr.msra.gmra.mxu1 %v165_v27 }
 0x1c5   :  { %v254_v32 = vpop.f32.mrf.mxu1 }
 0x1c6   :  { %v255_v34 = vadd.f32 %v400_v31, %v254_v32 }
 0x1c7   :  { %v462_v33 = vpop.f32.mrf.mxu1 }
 0x1c8   :  { %v261_v38 = vmax.f32 %v255_v34, 0.0 }
 0x1c9   :  { %v257_v35 = vpop.f32.mrf.mxu1 }
 0x1ca   :  { %v258_v36 = vadd.f32 %v400_v31, %v257_v35 }
 0x1cb   :  { %v463_v37 = vpop.f32.mrf.mxu1 }
 0x1cc   :  { %v262_v39 = vmax.f32 %v258_v36, 0.0 }
 0x1ce   :  { %v280_v40 = vpack.c.bf16 %v262_v39, %v261_v38 }
 0x1d0   :  { %481 = vmatmul.mubr.bf16.vlgmr.msra.gmra.mxu0 %v280_v40 }
 0x290   :  { %v369_v42 = vpop.f32.mrf.mxu0 }
 0x291   :  { %v370_v43 = vadd.f32 %v409_v41, %v369_v42 }
 0x292   :  { %v482_v44 = vpop.f32.mrf.mxu0 }
 0x293   :  { %376 = vst [vmem:[#allocation10] sm:$0xff] %v370_v43 }
 0x294   :  { %v372_v45 = vpop.f32.mrf.mxu0 }
 0x295   :  { %v373_v46 = vadd.f32 %v409_v41, %v372_v45 }
 0x296   :  { %v483_v47 = vpop.f32.mrf.mxu0 }
 0x297   :  { %377 = vst [vmem:[#allocation10 + $0x8] sm:$0xff] %v373_v46 }
 0x298   :  { %603 = shalt.err (!%p600_p10)
}
 0x299   :  { %389 = dma.vmem_to_hbm [thread:$0]  %s384_s27, 256, %s740_s7, [#allocation4], %s624_s11, %s624_s11, %s625_s12  }
 0x29a   :  { %618 = dma.done.wait [#allocation4], 256  }
 0x29b   :  { %619 = vsyncadd [#allocation4], 4294967040 }
 0x29c   :  { %393 = vsyncpa [#allocation3], 1 }
 0x29d   :  { %394 = vsyncpa [#allocation6], 1 }
 0x29e   :  { %395 = vsyncpa [#allocation9], 1 }
 0x29f   :  { %396 = vsyncpa [#allocation4], 1 }

</bundles_post_ra>
